<compile_context>
chip_gen: v5e
topology: v5e:2x2
jax: 0.10.0
libtpu: 0.0.40
codegen_flags: <defaults>
</compile_context>

<pallas_src>
import jax
import jax.numpy as jnp
from jax.experimental import pallas as pl
from jax.experimental.pallas import tpu as pltpu


def _round_up(x, m):
    return (x + m - 1) // m * m


def _attrs_mlp_kernel(x_ref, w1_ref, b1_ref, w2_ref, b2_ref, o_ref):
    # Cast x to the MXU dtype inside the kernel (cheap VPU work hidden under
    # the MXU); two matmuls with f32 accumulation; f32 elementwise epilogue.
    x = x_ref[...].astype(w1_ref.dtype)
    h = jnp.dot(x, w1_ref[...], preferred_element_type=jnp.float32)
    h = h + b1_ref[...]                                   # bias (f32)
    h = jnp.where(h >= 0, h, jnp.float32(0.2) * h)        # LeakyReLU(0.2), VPU
    y = jnp.dot(h.astype(w2_ref.dtype), w2_ref[...],
                preferred_element_type=jnp.float32)
    y = y + b2_ref[...]
    o_ref[...] = y.astype(o_ref.dtype)                    # lane-dense (Ap % 128 == 0)


def prepare_params(params, *, use_bf16=True):
    """Pad/cast weights ONCE (hoisted out of the per-call forward path).

    Zero padding of H and A up to multiples of 128 is numerically exact.
    Weights are stored (in_features, out_features) so the kernel computes
    x @ W, identical to PyTorch's x @ W.T.
    """
    w1, b1, w2, b2 = params["w1"], params["b1"], params["w2"], params["b2"]
    D, H = w1.shape
    A = w2.shape[1]
    Hp = _round_up(H, 128)            # lane-dense hidden activation
    Ap = _round_up(A, 128)            # lane-dense output (unmasked vst)
    wdt = jnp.bfloat16 if use_bf16 else jnp.float32

    return {
        "w1": jnp.zeros((D, Hp), wdt).at[:, :H].set(w1.astype(wdt)),
        "b1": jnp.zeros((1, Hp), jnp.float32).at[:, :H].set(b1.astype(jnp.float32)),
        "w2": jnp.zeros((Hp, Ap), wdt).at[:H, :A].set(w2.astype(wdt)),
        "b2": jnp.zeros((1, Ap), jnp.float32).at[:, :A].set(b2.astype(jnp.float32)),
        "D": int(D), "H": int(H), "A": int(A), "Hp": int(Hp), "Ap": int(Ap),
    }


def attrs_classifier_forward(x, prepared, *, batch_tile=1024,
                             out_dtype=jnp.float32):
    """x: any shape (B, ...); flattened to (B, input_dim) like x.view(B, -1)."""
    D, A = prepared["D"], prepared["A"]
    Hp, Ap = prepared["Hp"], prepared["Ap"]
    w1_p, b1_p = prepared["w1"], prepared["b1"]
    w2_p, b2_p = prepared["w2"], prepared["b2"]

    B = x.shape[0]
    x2d = x.reshape(B, -1)
    assert x2d.shape[1] == D, f"input_dim mismatch: {x2d.shape[1]} vs {D}"

    # Pad ONLY the ragged batch remainder to a 16-row (bf16 vreg) multiple;
    # x keeps its original dtype (cast happens in-kernel).
    Bp = _round_up(max(B, 1), 16)
    x_in = x2d if Bp == B else jnp.zeros((Bp, D), x2d.dtype).at[:B].set(x2d)

    # Batch tile: big for DMA efficiency; >= 2 tiles when possible so the
    # "parallel" axis can shard across v7x's two TensorCores. The last tile
    # may be partial (grid = cdiv); rows are independent, OOB rows get sliced
    # away below, so a partial tile is exact.
    if Bp >= 32:
        TB = min(batch_tile, _round_up(pl.cdiv(Bp, 2), 16))
    else:
        TB = Bp

    w_item = jnp.dtype(w1_p.dtype).itemsize
    x_item = jnp.dtype(x_in.dtype).itemsize
    o_item = jnp.dtype(out_dtype).itemsize

    def _vmem_bytes(tb):
        # double-buffered x tile + output tile, (double-buffered) resident
        # weights/biases, ~2 MiB slack for compiler internals.
        return (2 * (D * Hp + Hp * Ap) * w_item + 2 * (Hp + Ap) * 4
                + 2 * tb * D * x_item + 2 * tb * Ap * o_item + (2 << 20))

    # Defensive: shrink the batch tile until the estimate fits a v7x-safe
    # budget (64 MiB physical VMEM per TensorCore).
    while TB > 16 and _vmem_bytes(TB) > (48 << 20):
        TB = max(16, _round_up(TB // 2, 16))

    n_tiles = pl.cdiv(Bp, TB)
    vmem_limit = int(min(max(2 * _vmem_bytes(TB), 32 << 20), 56 << 20))

    cost = pl.CostEstimate(
        flops=2 * Bp * (D * Hp + Hp * Ap),
        transcendentals=0,
        bytes_accessed=(Bp * D * x_item + (D * Hp + Hp * Ap) * w_item
                        + (Hp + Ap) * 4 + Bp * Ap * o_item),
    )

    out_p = pl.pallas_call(
        _attrs_mlp_kernel,
        out_shape=jax.ShapeDtypeStruct((Bp, Ap), out_dtype),
        grid=(n_tiles,),
        in_specs=[
            pl.BlockSpec((TB, D), lambda i: (i, 0)),    # x: streams per batch tile
            pl.BlockSpec((D, Hp), lambda i: (0, 0)),    # w1: resident
            pl.BlockSpec((1, Hp), lambda i: (0, 0)),    # b1: resident
            pl.BlockSpec((Hp, Ap), lambda i: (0, 0)),   # w2: resident
            pl.BlockSpec((1, Ap), lambda i: (0, 0)),    # b2: resident
        ],
        out_specs=pl.BlockSpec((TB, Ap), lambda i: (i, 0)),
        compiler_params=pltpu.CompilerParams(
            dimension_semantics=("parallel",),
            vmem_limit_bytes=vmem_limit,
        ),
        cost_estimate=cost,
    )(x_in, w1_p, b1_p, w2_p, b2_p)

    # Slice away batch / lane padding outside the kernel.
    return out_p[:B, :A]


def init_params(key, input_dim, latent_dim, num_attributes):
    """Deterministic init mimicking torch.nn.Linear (uniform +/- 1/sqrt(fan_in))."""
    k1, k2, k3, k4 = jax.random.split(key, 4)
    lim1 = 1.0 / jnp.sqrt(jnp.float32(input_dim))
    lim2 = 1.0 / jnp.sqrt(jnp.float32(latent_dim))
    return {
        "w1": jax.random.uniform(k1, (input_dim, latent_dim), jnp.float32, -lim1, lim1),
        "b1": jax.random.uniform(k2, (latent_dim,), jnp.float32, -lim1, lim1),
        "w2": jax.random.uniform(k3, (latent_dim, num_attributes), jnp.float32, -lim2, lim2),
        "b2": jax.random.uniform(k4, (num_attributes,), jnp.float32, -lim2, lim2),
    }


def _reference(x, params, use_bf16=True):
    """Same math / same mixed precision as the kernel, in plain jnp."""
    dt = jnp.bfloat16 if use_bf16 else jnp.float32
    x2d = x.reshape(x.shape[0], -1)
    h = jnp.dot(x2d.astype(dt), params["w1"].astype(dt),
                preferred_element_type=jnp.float32)
    h = h + params["b1"].astype(jnp.float32)
    h = jnp.where(h >= 0, h, 0.2 * h)
    y = jnp.dot(h.astype(dt), params["w2"].astype(dt),
                preferred_element_type=jnp.float32)
    return y + params["b2"].astype(jnp.float32)


def _reference_f32(x, params):
    x2d = x.reshape(x.shape[0], -1).astype(jnp.float32)
    h = x2d @ params["w1"] + params["b1"]
    h = jnp.where(h >= 0, h, 0.2 * h)
    return h @ params["w2"] + params["b2"]


if __name__ == "__main__":
    # Small shapes consistent with the module's forward:
    # x.view(B, -1) -> input_dim = 4*16*16 = 1024.
    B, C, Hh, Ww = 2, 4, 16, 16
    input_dim = C * Hh * Ww
    latent_dim = 64
    num_attributes = 40

    key = jax.random.PRNGKey(0)
    kx, kp = jax.random.split(key)
    x = jax.random.normal(kx, (B, C, Hh, Ww), jnp.float32)
    params = init_params(kp, input_dim, latent_dim, num_attributes)

    # Weights are padded / cast to bf16 exactly once, outside the forward path.
    prepared = prepare_params(params, use_bf16=True)

    fwd = jax.jit(lambda xx: attrs_classifier_forward(xx, prepared))
    out = jax.block_until_ready(fwd(x))
    assert out.shape == (B, num_attributes)

    # Check against a reference using identical mixed precision.
    ref = _reference(x, params, use_bf16=True)
    assert jnp.allclose(out, ref, atol=3e-3, rtol=3e-3), \
        "mismatch vs matched-precision reference"

    # Loose sanity check against the full-f32 PyTorch-equivalent math.
    ref_f32 = _reference_f32(x, params)
    assert jnp.allclose(out, ref_f32, atol=5e-2, rtol=5e-2), \
        "mismatch vs f32 reference"

    print("KERNEL_OK")
</pallas_src>

<mosaic_0001>
module attributes {stable_mosaic.version = 11 : i64} {
  func.func @_attrs_mlp_kernel(%arg0: i32, %arg1: memref<16x1024xf32, #tpu.memory_space<vmem>>, %arg2: memref<1024x128xbf16, #tpu.memory_space<vmem>>, %arg3: memref<1x128xf32, #tpu.memory_space<vmem>>, %arg4: memref<128x128xbf16, #tpu.memory_space<vmem>>, %arg5: memref<1x128xf32, #tpu.memory_space<vmem>>, %arg6: memref<16x128xf32, #tpu.memory_space<vmem>>) attributes {dimension_semantics = [#tpu.dimension_semantics<parallel>], iteration_bounds = array<i64: 1>, scalar_prefetch = 0 : i64, scratch_operands = 0 : i64, tpu.core_type = #tpu.core_type<tc>, window_params = [{transform_indices = @transform_0, window_bounds = array<i64: 16, 1024>}, {pipeline_mode = #tpu.pipeline_mode<synchronous>, transform_indices = @transform_1, window_bounds = array<i64: 1024, 128>}, {pipeline_mode = #tpu.pipeline_mode<synchronous>, transform_indices = @transform_2, window_bounds = array<i64: 1, 128>}, {pipeline_mode = #tpu.pipeline_mode<synchronous>, transform_indices = @transform_3, window_bounds = array<i64: 128, 128>}, {pipeline_mode = #tpu.pipeline_mode<synchronous>, transform_indices = @transform_4, window_bounds = array<i64: 1, 128>}, {transform_indices = @transform_5, window_bounds = array<i64: 16, 128>}]} {
    %c0 = arith.constant 0 : index
    %c0_0 = arith.constant 0 : index
    %0 = vector.load %arg1[%c0, %c0_0] : memref<16x1024xf32, #tpu.memory_space<vmem>>, vector<16x1024xf32>
    %1 = arith.truncf %0 : vector<16x1024xf32> to vector<16x1024xbf16>
    %c0_1 = arith.constant 0 : index
    %c0_2 = arith.constant 0 : index
    %2 = vector.load %arg2[%c0_1, %c0_2] : memref<1024x128xbf16, #tpu.memory_space<vmem>>, vector<1024x128xbf16>
    %cst = arith.constant dense<0.000000e+00> : vector<16x128xf32>
    %3 = tpu.matmul %1, %2, %cst {dimension_numbers = #tpu.dot_dimension_numbers<[1], [0], [0], [1], [0, 0, 1, 1], [], []>} : vector<16x1024xbf16>, vector<1024x128xbf16>, vector<16x128xf32> -> vector<16x128xf32>
    %c0_3 = arith.constant 0 : index
    %c0_4 = arith.constant 0 : index
    %4 = vector.load %arg3[%c0_3, %c0_4] : memref<1x128xf32, #tpu.memory_space<vmem>>, vector<1x128xf32>
    %5 = vector.broadcast %4 : vector<1x128xf32> to vector<16x128xf32>
    %6 = arith.addf %3, %5 : vector<16x128xf32>
    %cst_5 = arith.constant 0.000000e+00 : f32
    %7 = vector.broadcast %cst_5 : f32 to vector<16x128xf32>
    %8 = arith.cmpf oge, %6, %7 : vector<16x128xf32>
    %cst_6 = arith.constant 2.000000e-01 : f32
    %9 = vector.broadcast %cst_6 : f32 to vector<16x128xf32>
    %10 = arith.mulf %9, %6 : vector<16x128xf32>
    %11 = arith.select %8, %6, %10 : vector<16x128xi1>, vector<16x128xf32>
    %12 = arith.truncf %11 : vector<16x128xf32> to vector<16x128xbf16>
    %c0_7 = arith.constant 0 : index
    %c0_8 = arith.constant 0 : index
    %13 = vector.load %arg4[%c0_7, %c0_8] : memref<128x128xbf16, #tpu.memory_space<vmem>>, vector<128x128xbf16>
    %cst_9 = arith.constant dense<0.000000e+00> : vector<16x128xf32>
    %14 = tpu.matmul %12, %13, %cst_9 {dimension_numbers = #tpu.dot_dimension_numbers<[1], [0], [0], [1], [0, 0, 1, 1], [], []>} : vector<16x128xbf16>, vector<128x128xbf16>, vector<16x128xf32> -> vector<16x128xf32>
    %c0_10 = arith.constant 0 : index
    %c0_11 = arith.constant 0 : index
    %15 = vector.load %arg5[%c0_10, %c0_11] : memref<1x128xf32, #tpu.memory_space<vmem>>, vector<1x128xf32>
    %16 = vector.broadcast %15 : vector<1x128xf32> to vector<16x128xf32>
    %17 = arith.addf %14, %16 : vector<16x128xf32>
    %c0_12 = arith.constant 0 : index
    %c0_13 = arith.constant 0 : index
    %18 = vector.load %arg6[%c0_12, %c0_13] : memref<16x128xf32, #tpu.memory_space<vmem>>, vector<16x128xf32>
    tpu.vector_store %arg6[%c0_12, %c0_13], %17 {strides = array<i32>} : memref<16x128xf32, #tpu.memory_space<vmem>>, vector<16x128xf32>,
    return
  }
  func.func @transform_0(%arg0: i32) -> (i32, i32) {
    %c0_i32 = arith.constant 0 : i32
    %c0_i32_0 = arith.constant 0 : i32
    return %arg0, %c0_i32 : i32, i32
  }
  func.func @transform_1(%arg0: i32) -> (i32, i32) {
    %c0_i32 = arith.constant 0 : i32
    %c0_i32_0 = arith.constant 0 : i32
    %c0_i32_1 = arith.constant 0 : i32
    return %c0_i32, %c0_i32_0 : i32, i32
  }
  func.func @transform_2(%arg0: i32) -> (i32, i32) {
    %c0_i32 = arith.constant 0 : i32
    %c0_i32_0 = arith.constant 0 : i32
    %c0_i32_1 = arith.constant 0 : i32
    return %c0_i32, %c0_i32_0 : i32, i32
  }
  func.func @transform_3(%arg0: i32) -> (i32, i32) {
    %c0_i32 = arith.constant 0 : i32
    %c0_i32_0 = arith.constant 0 : i32
    %c0_i32_1 = arith.constant 0 : i32
    return %c0_i32, %c0_i32_0 : i32, i32
  }
  func.func @transform_4(%arg0: i32) -> (i32, i32) {
    %c0_i32 = arith.constant 0 : i32
    %c0_i32_0 = arith.constant 0 : i32
    %c0_i32_1 = arith.constant 0 : i32
    return %c0_i32, %c0_i32_0 : i32, i32
  }
  func.func @transform_5(%arg0: i32) -> (i32, i32) {
    %c0_i32 = arith.constant 0 : i32
    %c0_i32_0 = arith.constant 0 : i32
    return %arg0, %c0_i32 : i32, i32
  }
}

</mosaic_0001>

<bundles_post_ra>
// kernel: _lambda_.1
= control target key start
LH: loop header
LB: loop body
LE: loop exit
PB: predicated region body
PF: predicated region fallthrough
CT: control target
= control target key end

     0   :  { %10 = vsyncpa [#allocation3], 0  ;;  %s1175_s21 = smov [#allocation2]   ;;  %s1176_s23 = smov 64   ;;  %s1295_s0 = inlined_call_operand.vmem [shape: f32[16,1024], index: 0, kind: input, shape index: {}]   ;;  %s1296_s1 = inlined_call_operand.hbm [shape: bf16[1024,128], index: 1, kind: input, shape index: {}]   ;;  %s1297_s2 = inlined_call_operand.vmem [shape: f32[1,128], index: 2, kind: input, shape index: {}]   ;;  %s1298_s3 = inlined_call_operand.vmem [shape: bf16[128,128], index: 3, kind: input, shape index: {}]   ;;  %s1299_s4 = inlined_call_operand.vmem [shape: f32[1,128], index: 4, kind: input, shape index: {}]   ;;  %s1300_s5 = inlined_call_operand.vmem [shape: f32[16,128], index: 5, kind: output, shape index: {}]  }
   0x1   :  { %s17_s20 = sshll.u32 %s1296_s1, 4  ;;  %s19_s22 = sshll.u32 %s1175_s21, 4  ;;  %s18_s20 = int_to_ptr.hbm [resolvable:$true] %s17_s20  ;;  %s20_s22 = int_to_ptr.vmem [resolvable:$true] %s19_s22 }
   0x2   :  { %s1177_s24 = smov 4  }
   0x3   :  { %25 = dma.hbm_to_vmem [thread:$0]  %s18_s20, 8192, %s20_s22, [#allocation3], %s1176_s23, %s1176_s23, %s1177_s24  }
   0x4   :  { %1173 = dma.done.wait [#allocation3], 8192  }
   0x5   :  { %1174 = vsyncadd [#allocation3], 4294959104  ;;  %v1079_v0 = vld [vmem:[#allocation2 + $0x38] sm:$0xff]  ;;  %v1078_v4 = vld [vmem:[#allocation2 + $0x30] sm:$0xff] }
   0x6   :  { %v1087_v1 = vld [vmem:[#allocation2 + $0x78] sm:$0xff]  ;;  %576 = vmatpush.bf16.msra.mxu0 %v1079_v0  ;;  %v1086_v5 = vld [vmem:[#allocation2 + $0x70] sm:$0xff]  ;;  %v1077_v8 = vld [vmem:[#allocation2 + $0x28] sm:$0xff] }
   0x7   :  { %v1095_v2 = vld [vmem:[#allocation2 + $0xb8] sm:$0xff]  ;;  %590 = vmatpush.bf16.msra.mxu1 %v1087_v1  ;;  %v1094_v6 = vld [vmem:[#allocation2 + $0xb0] sm:$0xff]  ;;  %v1085_v9 = vld [vmem:[#allocation2 + $0x68] sm:$0xff] }
   0x8   :  { %v1103_v3 = vld [vmem:[#allocation2 + $0xf8] sm:$0xff]  ;;  %604 = vmatpush.bf16.msra.mxu2 %v1095_v2  ;;  %v1102_v7 = vld [vmem:[#allocation2 + $0xf0] sm:$0xff]  ;;  %v1093_v10 = vld [vmem:[#allocation2 + $0xa8] sm:$0xff] }
   0x9   :  { %618 = vmatpush.bf16.msra.mxu3 %v1103_v3  ;;  %v1101_v11 = vld [vmem:[#allocation2 + $0xe8] sm:$0xff]  ;;  %v1076_v12 = vld [vmem:[#allocation2 + $0x20] sm:$0xff]  ;;  %v1075_v16 = vld [vmem:[#allocation2 + $0x18] sm:$0xff] }
   0xa   :  { %577 = vmatpush.bf16.msra.mxu0 %v1078_v4  ;;  %v1084_v13 = vld [vmem:[#allocation2 + $0x60] sm:$0xff]  ;;  %v1083_v17 = vld [vmem:[#allocation2 + $0x58] sm:$0xff]  ;;  %v1074_v20 = vld [vmem:[#allocation2 + $0x10] sm:$0xff] }
   0xb   :  { %591 = vmatpush.bf16.msra.mxu1 %v1086_v5  ;;  %v1092_v14 = vld [vmem:[#allocation2 + $0xa0] sm:$0xff]  ;;  %v1091_v18 = vld [vmem:[#allocation2 + $0x98] sm:$0xff]  ;;  %v1082_v21 = vld [vmem:[#allocation2 + $0x50] sm:$0xff] }
   0xc   :  { %605 = vmatpush.bf16.msra.mxu2 %v1094_v6  ;;  %v1100_v15 = vld [vmem:[#allocation2 + $0xe0] sm:$0xff]  ;;  %v1099_v19 = vld [vmem:[#allocation2 + $0xd8] sm:$0xff]  ;;  %v1090_v22 = vld [vmem:[#allocation2 + $0x90] sm:$0xff] }
   0xd   :  { %619 = vmatpush.bf16.msra.mxu3 %v1102_v7  ;;  %v1098_v23 = vld [vmem:[#allocation2 + $0xd0] sm:$0xff]  ;;  %v1073_v24 = vld [vmem:[#allocation2 + $0x8] sm:$0xff]  ;;  %v1072_v28 = vld [vmem:[#allocation2] sm:$0xff] }
   0xe   :  { %578 = vmatpush.bf16.msra.mxu0 %v1077_v8  ;;  %v1081_v25 = vld [vmem:[#allocation2 + $0x48] sm:$0xff]  ;;  %v1080_v29 = vld [vmem:[#allocation2 + $0x40] sm:$0xff]  ;;  %v1111_v32 = vld [vmem:[#allocation2 + $0x138] sm:$0xff] }
   0xf   :  { %592 = vmatpush.bf16.msra.mxu1 %v1085_v9  ;;  %v1089_v26 = vld [vmem:[#allocation2 + $0x88] sm:$0xff]  ;;  %v1088_v30 = vld [vmem:[#allocation2 + $0x80] sm:$0xff]  ;;  %v1119_v33 = vld [vmem:[#allocation2 + $0x178] sm:$0xff] }
  0x10   :  { %606 = vmatpush.bf16.msra.mxu2 %v1093_v10  ;;  %v1097_v27 = vld [vmem:[#allocation2 + $0xc8] sm:$0xff]  ;;  %v1096_v31 = vld [vmem:[#allocation2 + $0xc0] sm:$0xff]  ;;  %v38_v34 = vld [vmem:[%s1295_s0 + $0x10] sm:$0xff] }
  0x11   :  { %620 = vmatpush.bf16.msra.mxu3 %v1101_v11  ;;  %v46_v35 = vld [vmem:[%s1295_s0 + $0x50] sm:$0xff]  ;;  %v36_v36 = vld [vmem:[%s1295_s0] sm:$0xff]  ;;  %v39_v38 = vld [vmem:[%s1295_s0 + $0x18] sm:$0xff] }
  0x12   :  { %579 = vmatpush.bf16.msra.mxu0 %v1076_v12  ;;  %v44_v37 = vld [vmem:[%s1295_s0 + $0x40] sm:$0xff]  ;;  %v47_v39 = vld [vmem:[%s1295_s0 + $0x58] sm:$0xff]  ;;  %v37_v40 = vld [vmem:[%s1295_s0 + $0x8] sm:$0xff]  ;;  %v54_v44 = vpack.c.bf16 %v46_v35, %v38_v34 }
  0x13   :  { %593 = vmatpush.bf16.msra.mxu1 %v1084_v13  ;;  %v45_v41 = vld [vmem:[%s1295_s0 + $0x48] sm:$0xff]  ;;  %v1127_v42 = vld [vmem:[#allocation2 + $0x1b8] sm:$0xff]  ;;  %v52_v45 = vpack.c.bf16 %v44_v37, %v36_v36  ;;  %v55_v46 = vpack.c.bf16 %v47_v39, %v39_v38  ;;  %v1110_v48 = vld [vmem:[#allocation2 + $0x130] sm:$0xff] }
  0x14   :  { %607 = vmatpush.bf16.msra.mxu2 %v1092_v14  ;;  %v1135_v43 = vld [vmem:[#allocation2 + $0x1f8] sm:$0xff]  ;;  %v53_v47 = vpack.c.bf16 %v45_v41, %v37_v40  ;;  %v1118_v49 = vld [vmem:[#allocation2 + $0x170] sm:$0xff]  ;;  %v1109_v52 = vld [vmem:[#allocation2 + $0x128] sm:$0xff] }
  0x15   :  { %621 = vmatpush.bf16.msra.mxu3 %v1100_v15  ;;  %v1126_v50 = vld [vmem:[#allocation2 + $0x1b0] sm:$0xff]  ;;  %v1117_v53 = vld [vmem:[#allocation2 + $0x168] sm:$0xff]  ;;  %v1108_v56 = vld [vmem:[#allocation2 + $0x120] sm:$0xff] }
  0x16   :  { %580 = vmatpush.bf16.msra.mxu0 %v1075_v16  ;;  %v1134_v51 = vld [vmem:[#allocation2 + $0x1f0] sm:$0xff]  ;;  %v1125_v54 = vld [vmem:[#allocation2 + $0x1a8] sm:$0xff]  ;;  %v1116_v57 = vld [vmem:[#allocation2 + $0x160] sm:$0xff] }
  0x17   :  { %594 = vmatpush.bf16.msra.mxu1 %v1083_v17  ;;  %v1133_v55 = vld [vmem:[#allocation2 + $0x1e8] sm:$0xff]  ;;  %v1124_v58 = vld [vmem:[#allocation2 + $0x1a0] sm:$0xff]  ;;  %v1107_v60 = vld [vmem:[#allocation2 + $0x118] sm:$0xff] }
  0x18   :  { %608 = vmatpush.bf16.msra.mxu2 %v1091_v18  ;;  %v1132_v59 = vld [vmem:[#allocation2 + $0x1e0] sm:$0xff]  ;;  %v1115_v61 = vld [vmem:[#allocation2 + $0x158] sm:$0xff]  ;;  %v1106_v0 = vld [vmem:[#allocation2 + $0x110] sm:$0xff] }
  0x19   :  { %622 = vmatpush.bf16.msra.mxu3 %v1099_v19  ;;  %v1123_v62 = vld [vmem:[#allocation2 + $0x198] sm:$0xff]  ;;  %v1114_v1 = vld [vmem:[#allocation2 + $0x150] sm:$0xff]  ;;  %v1105_v4 = vld [vmem:[#allocation2 + $0x108] sm:$0xff] }
  0x1a   :  { %581 = vmatpush.bf16.msra.mxu0 %v1074_v20  ;;  %v1131_v63 = vld [vmem:[#allocation2 + $0x1d8] sm:$0xff]  ;;  %v1122_v2 = vld [vmem:[#allocation2 + $0x190] sm:$0xff]  ;;  %v1113_v5 = vld [vmem:[#allocation2 + $0x148] sm:$0xff] }
  0x1b   :  { %595 = vmatpush.bf16.msra.mxu1 %v1082_v21  ;;  %v1130_v3 = vld [vmem:[#allocation2 + $0x1d0] sm:$0xff]  ;;  %v1121_v6 = vld [vmem:[#allocation2 + $0x188] sm:$0xff]  ;;  %v1104_v8 = vld [vmem:[#allocation2 + $0x100] sm:$0xff] }
  0x1c   :  { %609 = vmatpush.bf16.msra.mxu2 %v1090_v22  ;;  %v1129_v7 = vld [vmem:[#allocation2 + $0x1c8] sm:$0xff]  ;;  %v1112_v9 = vld [vmem:[#allocation2 + $0x140] sm:$0xff]  ;;  %v42_v16 = vld [vmem:[%s1295_s0 + $0x30] sm:$0xff] }
  0x1d   :  { %623 = vmatpush.bf16.msra.mxu3 %v1098_v23  ;;  %v1120_v10 = vld [vmem:[#allocation2 + $0x180] sm:$0xff]  ;;  %v41_v14 = vld [vmem:[%s1295_s0 + $0x28] sm:$0xff]  ;;  %v50_v17 = vld [vmem:[%s1295_s0 + $0x70] sm:$0xff] }
  0x1e   :  { %582 = vmatpush.bf16.msra.mxu0 %v1073_v24  ;;  %v1128_v11 = vld [vmem:[#allocation2 + $0x1c0] sm:$0xff]  ;;  %v49_v15 = vld [vmem:[%s1295_s0 + $0x68] sm:$0xff]  ;;  %v43_v18 = vld [vmem:[%s1295_s0 + $0x38] sm:$0xff]  ;;  %v58_v22 = vpack.c.bf16 %v50_v17, %v42_v16 }
  0x1f   :  { %596 = vmatpush.bf16.msra.mxu1 %v1081_v25  ;;  %v40_v12 = vld [vmem:[%s1295_s0 + $0x20] sm:$0xff]  ;;  %v51_v19 = vld [vmem:[%s1295_s0 + $0x78] sm:$0xff]  ;;  %v57_v21 = vpack.c.bf16 %v49_v15, %v41_v14  ;;  %v1142_v25 = vld [vmem:[%s1298_s3 + $0x30] sm:$0xff] }
  0x20   :  { %610 = vmatpush.bf16.msra.mxu2 %v1089_v26  ;;  %v48_v13 = vld [vmem:[%s1295_s0 + $0x60] sm:$0xff]  ;;  %v59_v23 = vpack.c.bf16 %v51_v19, %v43_v18  ;;  %v1143_v24 = vld [vmem:[%s1298_s3 + $0x38] sm:$0xff]  ;;  %v1141_v26 = vld [vmem:[%s1298_s3 + $0x28] sm:$0xff] }
  0x21   :  { %624 = vmatpush.bf16.msra.mxu3 %v1097_v27  ;;  %v56_v20 = vpack.c.bf16 %v48_v13, %v40_v12  ;;  %v1140_v27 = vld [vmem:[%s1298_s3 + $0x20] sm:$0xff] }
  0x22   :  { %583 = vmatpush.bf16.msra.mxu0 %v1072_v28  ;;  %v1139_v28 = vld [vmem:[%s1298_s3 + $0x18] sm:$0xff]  ;;  %v1136_v34 = vld [vmem:[%s1298_s3] sm:$0xff] }
  0x23   :  { %597 = vmatpush.bf16.msra.mxu1 %v1080_v29  ;;  %v1138_v29 = vld [vmem:[%s1298_s3 + $0x10] sm:$0xff] }
  0x24   :  { %611 = vmatpush.bf16.msra.mxu2 %v1088_v30 }
  0x25   :  { %625 = vmatpush.bf16.msra.mxu3 %v1096_v31  ;;  %584 = vmatmul.bf16.vlgmr.msra.gmra.mxu0 %v52_v45  ;;  %v1137_v31 = vld [vmem:[%s1298_s3 + $0x8] sm:$0xff] }
  0x26   :  { %632 = vmatpush.bf16.msrb.mxu0 %v1111_v32  ;;  %598 = vmatmul.bf16.vlgmr.msra.gmra.mxu1 %v53_v47 }
  0x27   :  { %646 = vmatpush.bf16.msrb.mxu1 %v1119_v33  ;;  %612 = vmatmul.bf16.vlgmr.msra.gmra.mxu2 %v54_v44  ;;  %v1147_v33 = vld [vmem:[%s1297_s2] ss:$0 sm:$0xff] }
  0x28   :  { %660 = vmatpush.bf16.msrb.mxu2 %v1127_v42  ;;  %626 = vmatmul.bf16.vlgmr.msra.gmra.mxu3 %v55_v46 }
  0x29   :  { %674 = vmatpush.bf16.msrb.mxu3 %v1135_v43 }
  0x2a   :  { %633 = vmatpush.bf16.msrb.mxu0 %v1110_v48 }
  0x2b   :  { %647 = vmatpush.bf16.msrb.mxu1 %v1118_v49 }
  0x2c   :  { %661 = vmatpush.bf16.msrb.mxu2 %v1126_v50 }
  0x2d   :  { %675 = vmatpush.bf16.msrb.mxu3 %v1134_v51 }
  0x2e   :  { %634 = vmatpush.bf16.msrb.mxu0 %v1109_v52 }
  0x2f   :  { %648 = vmatpush.bf16.msrb.mxu1 %v1117_v53 }
  0x30   :  { %662 = vmatpush.bf16.msrb.mxu2 %v1125_v54 }
  0x31   :  { %676 = vmatpush.bf16.msrb.mxu3 %v1133_v55 }
  0x32   :  { %635 = vmatpush.bf16.msrb.mxu0 %v1108_v56 }
  0x33   :  { %649 = vmatpush.bf16.msrb.mxu1 %v1116_v57 }
  0x34   :  { %663 = vmatpush.bf16.msrb.mxu2 %v1124_v58 }
  0x35   :  { %677 = vmatpush.bf16.msrb.mxu3 %v1132_v59 }
  0x36   :  { %636 = vmatpush.bf16.msrb.mxu0 %v1107_v60 }
  0x37   :  { %650 = vmatpush.bf16.msrb.mxu1 %v1115_v61 }
  0x38   :  { %664 = vmatpush.bf16.msrb.mxu2 %v1123_v62 }
  0x39   :  { %678 = vmatpush.bf16.msrb.mxu3 %v1131_v63 }
  0x3a   :  { %637 = vmatpush.bf16.msrb.mxu0 %v1106_v0 }
  0x3b   :  { %651 = vmatpush.bf16.msrb.mxu1 %v1114_v1 }
  0x3c   :  { %665 = vmatpush.bf16.msrb.mxu2 %v1122_v2 }
  0x3d   :  { %679 = vmatpush.bf16.msrb.mxu3 %v1130_v3 }
  0x3e   :  { %638 = vmatpush.bf16.msrb.mxu0 %v1105_v4 }
  0x3f   :  { %652 = vmatpush.bf16.msrb.mxu1 %v1113_v5 }
  0x40   :  { %666 = vmatpush.bf16.msrb.mxu2 %v1121_v6  ;;  %v1148_v6 = vld [vmem:[%s1299_s4] ss:$0 sm:$0xff] }
  0x41   :  { %680 = vmatpush.bf16.msrb.mxu3 %v1129_v7 }
  0x42   :  { %639 = vmatpush.bf16.msrb.mxu0 %v1104_v8 }
  0x43   :  { %653 = vmatpush.bf16.msrb.mxu1 %v1112_v9 }
  0x44   :  { %667 = vmatpush.bf16.msrb.mxu2 %v1120_v10 }
  0x45   :  { %681 = vmatpush.bf16.msrb.mxu3 %v1128_v11  ;;  %640 = vmatmul.bf16.vlgmr.msrb.gmra.mxu0 %v56_v20 }
  0x46   :  { %654 = vmatmul.bf16.vlgmr.msrb.gmra.mxu1 %v57_v21  ;;  %763 = vmatpush.bf16.msra.mxu0 %v1143_v24 }
  0x47   :  { %668 = vmatmul.bf16.vlgmr.msrb.gmra.mxu2 %v58_v22 }
  0x48   :  { %682 = vmatmul.bf16.vlgmr.msrb.gmra.mxu3 %v59_v23 }
  0x4a   :  { %764 = vmatpush.bf16.msra.mxu0 %v1142_v25 }
  0x4e   :  { %765 = vmatpush.bf16.msra.mxu0 %v1141_v26 }
  0x52   :  { %766 = vmatpush.bf16.msra.mxu0 %v1140_v27 }
  0x56   :  { %767 = vmatpush.bf16.msra.mxu0 %v1139_v28 }
  0x5a   :  { %768 = vmatpush.bf16.msra.mxu0 %v1138_v29 }
  0x5e   :  { %769 = vmatpush.bf16.msra.mxu0 %v1137_v31 }
  0x62   :  { %770 = vmatpush.bf16.msra.mxu0 %v1136_v34 }
  0xa2   :  { %v585_v30 = vpop.f32.mrf.mxu0 }
  0xa3   :  { %v599_v32 = vpop.f32.mrf.mxu1  ;;  %v586_v37 = vadd.f32 %v1147_v33, %v585_v30 }
  0xa5   :  { %v600_v39 = vadd.f32 %v599_v32, %v586_v37 }
  0xaa   :  { %v613_v35 = vpop.f32.mrf.mxu2  ;;  %v587_v38 = vpop.f32.mrf.mxu0 }
  0xab   :  { %v627_v36 = vpop.f32.mrf.mxu3  ;;  %v601_v40 = vpop.f32.mrf.mxu1  ;;  %v588_v41 = vadd.f32 %v1147_v33, %v587_v38  ;;  %v614_v42 = vadd.f32 %v613_v35, %v600_v39 }
  0xad   :  { %v602_v45 = vadd.f32 %v601_v40, %v588_v41  ;;  %v628_v47 = vadd.f32 %v627_v36, %v614_v42 }
  0xb2   :  { %v615_v43 = vpop.f32.mrf.mxu2 }
  0xb3   :  { %v629_v44 = vpop.f32.mrf.mxu3  ;;  %v616_v49 = vadd.f32 %v615_v43, %v602_v45 }
  0xb5   :  { %v630_v53 = vadd.f32 %v629_v44, %v616_v49 }
  0xc2   :  { %v641_v46 = vpop.f32.mrf.mxu0 }
  0xc3   :  { %v655_v48 = vpop.f32.mrf.mxu1  ;;  %v642_v50 = vadd.f32 %v641_v46, %v628_v47 }
  0xc5   :  { %v656_v54 = vadd.f32 %v655_v48, %v642_v50 }
  0xca   :  { %v669_v51 = vpop.f32.mrf.mxu2  ;;  %v643_v55 = vpop.f32.mrf.mxu0 }
  0xcb   :  { %v683_v52 = vpop.f32.mrf.mxu3  ;;  %v670_v56 = vadd.f32 %v669_v51, %v656_v54  ;;  %v644_v57 = vadd.f32 %v643_v55, %v630_v53  ;;  %v657_v58 = vpop.f32.mrf.mxu1 }
  0xcd   :  { %v684_v59 = vadd.f32 %v683_v52, %v670_v56  ;;  %v658_v60 = vadd.f32 %v657_v58, %v644_v57 }
  0xcf   :  { %v690_v0 = vmul.f32 0.2, %v684_v59  ;;  %vm688_vm0 = vcmp.ge.f32.partialorder %v684_v59, 0.0 }
  0xd1   :  { %v692_v3 = vsel %vm688_vm0, %v684_v59, %v690_v0 }
  0xd2   :  { %v671_v61 = vpop.f32.mrf.mxu2 }
  0xd3   :  { %v672_v62 = vadd.f32 %v671_v61, %v658_v60  ;;  %v685_v63 = vpop.f32.mrf.mxu3 }
  0xd5   :  { %v686_v1 = vadd.f32 %v685_v63, %v672_v62 }
  0xd7   :  { %vm689_vm1 = vcmp.ge.f32.partialorder %v686_v1, 0.0  ;;  %v691_v2 = vmul.f32 0.2, %v686_v1 }
  0xd9   :  { %v693_v4 = vsel %vm689_vm1, %v686_v1, %v691_v2 }
  0xda   :  { %v694_v5 = vpack.c.bf16 %v693_v4, %v692_v3 }
  0xdc   :  { %771 = vmatmul.bf16.vlgmr.msra.gmra.mxu0 %v694_v5 }
 0x159   :  { %v772_v7 = vpop.f32.mrf.mxu0 }
 0x15a   :  { %v773_v8 = vadd.f32 %v1148_v6, %v772_v7 }
 0x15c   :  { %777 = vst [vmem:[%s1300_s5] sm:$0xff] %v773_v8 }
 0x161   :  { %v774_v9 = vpop.f32.mrf.mxu0 }
 0x162   :  { %v775_v10 = vadd.f32 %v1148_v6, %v774_v9 }
 0x164   :  { %778 = vst [vmem:[%s1300_s5 + $0x8] sm:$0xff] %v775_v10 }
 0x165   :  { %783 = vsyncpa [#allocation3], 1 }

</bundles_post_ra>
